<compile_context>
chip_gen: v7x
topology: tpu7x:2x2x1
jax: 0.10.0
libtpu: 0.0.40
codegen_flags: <defaults>
</compile_context>

<pallas_src>
import functools

import jax
import jax.numpy as jnp
from jax.experimental import pallas as pl
from jax.experimental.pallas import tpu as pltpu


def _round_up(x, m):
    return ((x + m - 1) // m) * m


def _iou_accum_kernel(x_ref, t_ref, inter_ref, pcnt_ref, *,
                      cr, full_chunks, num_tiles,
                      last_unmasked, last_chunks, last_g0, f_rows, last_lanes):
    """Accumulate per-class intersection / (prob + onehot) sums for one row tile.

    x_ref    : (C, TR, 128) logits tile (class planes x rows x lanes)
    t_ref    : (1, TR, 128) int32 labels tile
    inter_ref: (C, 8, 128) resident accumulator: sum of p at the target class
    pcnt_ref : (C, 8, 128) resident accumulator: sum of (p + onehot)
    """
    i = pl.program_id(1)

    @pl.when(i == 0)
    def _zero():
        inter_ref[...] = jnp.zeros_like(inter_ref)
        pcnt_ref[...] = jnp.zeros_like(pcnt_ref)

    num_classes = x_ref.shape[0]
    nfold = cr // 8

    # Hoisted, loop-invariant class-id planes; compared against labels per chunk.
    cls_ids = jax.lax.broadcasted_iota(jnp.int32, (num_classes, cr, 128), 0)

    def fold8(v):
        # (C, cr, 128) -> (C, 8, 128): static sublane-slab adds (pure VPU).
        acc = v[:, 0:8, :]
        for k in range(1, nfold):
            acc = acc + v[:, k * 8:(k + 1) * 8, :]
        return acc

    def do_chunk(j, valid):
        if isinstance(j, int):
            start = j * cr
        else:
            start = pl.multiple_of(j * cr, cr)
        x = x_ref[:, pl.ds(start, cr), :].astype(jnp.float32)   # (C, cr, 128)
        t = t_ref[:, pl.ds(start, cr), :]                       # (1, cr, 128)
        if num_classes == 1:
            p = jax.nn.sigmoid(x)
        else:
            m = jnp.max(x, axis=0, keepdims=True)
            e = jnp.exp(x - m)
            # approx=True -> EUP vrcp in an otherwise-free slot; fine for a loss.
            p = e * pl.reciprocal(jnp.sum(e, axis=0, keepdims=True), approx=True)
        hit = cls_ids == t
        if valid is not None:
            # Select (never multiply-by-mask) so NaN/Inf from the padded garbage
            # region can never leak into the accumulators.
            hit = jnp.logical_and(hit, valid)
            p = jnp.where(valid, p, 0.0)
        inter_c = jnp.where(hit, p, 0.0)       # prob at the target class
        pcnt_c = jnp.where(hit, p + 1.0, p)    # prob + one-hot, one select
        inter_ref[...] += fold8(inter_c)
        pcnt_ref[...] += fold8(pcnt_c)

    def run_unmasked(hi):
        if hi <= 0:
            return
        if hi == 1:
            do_chunk(0, None)
            return

        @pl.loop(0, hi)
        def _(j):
            do_chunk(j, None)

    def run_tail():
        run_unmasked(last_unmasked)
        if last_chunks > last_unmasked:
            # Fully static validity mask for the single partial chunk.
            r = last_g0 + jax.lax.broadcasted_iota(jnp.int32, (1, cr, 128), 1)
            lane = jax.lax.broadcasted_iota(jnp.int32, (1, cr, 128), 2)
            valid = (r < f_rows) | ((r == f_rows) & (lane < last_lanes))
            do_chunk(last_unmasked, valid)

    has_tail = (last_chunks != full_chunks) or (last_chunks > last_unmasked)

    if not has_tail:
        run_unmasked(full_chunks)
    elif num_tiles == 1:
        run_tail()
    else:
        last = num_tiles - 1

        @pl.when(i != last)
        def _fast():
            run_unmasked(full_chunks)

        @pl.when(i == last)
        def _tail():
            run_tail()


def iou_loss_pallas(logits, target, smooth=1.0, reduction="mean", tile_pixels=65536):
    """IoULoss.forward.  logits: (N, C, H, W) float, target: (N, H, W) int."""
    N, C, H, W = logits.shape
    HW = H * W

    # Free reshapes only in the common case (HW % 128 == 0).
    x3 = logits.reshape(N, C, HW)
    t3 = target.astype(jnp.int32).reshape(N, 1, HW)

    R = -(-HW // 128)                 # rows holding at least one real pixel
    if HW != R * 128:
        # TODO(synk): the ragged-HW case costs one extra HBM pass for the pad.
        pad = R * 128 - HW
        x3 = jnp.pad(x3, ((0, 0), (0, 0), (0, pad)))
        t3 = jnp.pad(t3, ((0, 0), (0, 0), (0, pad)))
    x4 = x3.reshape(N, C, R, 128)
    t4 = t3.reshape(N, 1, R, 128)

    # Inner row-chunk size: keep per-temporary vreg footprint (C * cr / 8) small.
    cr = 8 * max(1, min(4, 8 // max(1, C)))

    # Generation-aware VMEM budget (v5e/v6e 128 MiB, v7x 64 MiB per core).
    itemsize = jnp.dtype(logits.dtype).itemsize
    try:
        vmem_cap = int(pltpu.get_tpu_info().vmem_capacity_bytes)
    except Exception:
        vmem_cap = 64 << 20           # assume smallest per-core VMEM (v7x)
    input_budget = min(40 << 20, int(vmem_cap * 0.45))

    # Large row tile (TR rows = TR*128 pixels) to amortize ~0.35us/grid-step.
    tr = max(cr, -(-min(tile_pixels, HW) // 128))
    tr = _round_up(tr, cr)
    while 2 * tr * 128 * (C * itemsize + 4) > input_budget and tr > cr:
        tr = max(cr, _round_up(max(cr, tr // 2), cr))

    num_tiles = -(-R // tr)
    full_chunks = tr // cr

    # Static tail bookkeeping (only the last tile ever needs masking).
    t0 = (num_tiles - 1) * tr               # first row of the last tile
    rows_in_last = R - t0
    f_rows = HW // 128                      # rows whose 128 lanes are all real
    last_lanes = HW - f_rows * 128          # real lanes in row f_rows (0 if none)
    last_chunks = -(-rows_in_last // cr)
    last_unmasked = min(last_chunks, max(0, f_rows - t0) // cr)
    last_g0 = t0 + last_unmasked * cr

    vmem_need = 2 * tr * 128 * (C * itemsize + 4) + 8 * C * 8 * 128 * 4 + (2 << 20)
    vmem_limit = int(min(max(vmem_need + (4 << 20), 16 << 20), int(vmem_cap * 0.7)))

    kernel = functools.partial(
        _iou_accum_kernel, cr=cr, full_chunks=full_chunks, num_tiles=num_tiles,
        last_unmasked=last_unmasked, last_chunks=last_chunks,
        last_g0=last_g0, f_rows=f_rows, last_lanes=last_lanes)

    # Per-batch-sample accumulator slabs so a "parallel" N axis can shard the
    # grid over both TensorCores on v7x; reduced over N in the JAX glue.
    # TODO(synk): for N == 1 on v7x, add a leading size-2 "parallel" axis that
    # splits the row range across the two cores with per-core slabs.
    acc_shape = jax.ShapeDtypeStruct((N, C, 8, 128), jnp.float32)

    def acc_spec():
        return pl.BlockSpec((pl.Squeezed(), C, 8, 128), lambda n, i: (n, 0, 0, 0))

    inter, pcnt = pl.pallas_call(
        kernel,
        out_shape=(acc_shape, acc_shape),
        grid_spec=pltpu.PrefetchScalarGridSpec(
            num_scalar_prefetch=0,
            grid=(N, num_tiles),
            in_specs=[
                pl.BlockSpec((pl.Squeezed(), C, tr, 128), lambda n, i: (n, 0, i, 0)),
                pl.BlockSpec((pl.Squeezed(), 1, tr, 128), lambda n, i: (n, 0, i, 0)),
            ],
            out_specs=[acc_spec(), acc_spec()],
        ),
        compiler_params=pltpu.CompilerParams(
            dimension_semantics=("parallel", "arbitrary"),
            vmem_limit_bytes=vmem_limit,
        ),
    )(x4, t4)

    intersection = jnp.sum(inter, axis=(0, 2, 3))                     # (C,)
    union = jnp.sum(pcnt, axis=(0, 2, 3)) - intersection              # (C,)
    iou = (intersection + smooth) / (union + smooth)
    iou_loss = 1.0 - iou
    if reduction == "mean":
        return jnp.mean(iou_loss)
    elif reduction == "sum":
        return jnp.sum(iou_loss)
    return iou_loss


def _iou_loss_ref(logits, target, smooth=1.0):
    # Pure-JAX reference of the PyTorch forward, for a sanity check.
    C = logits.shape[1]
    probs = jax.nn.sigmoid(logits) if C == 1 else jax.nn.softmax(logits, axis=1)
    onehot = jax.nn.one_hot(target, C, axis=1, dtype=probs.dtype)
    dims = (0, 2, 3)
    inter = jnp.sum(probs * onehot, dims)
    union = jnp.sum(probs + onehot, dims) - inter
    iou = (inter + smooth) / (union + smooth)
    return jnp.mean(1.0 - iou)


if __name__ == "__main__":
    key = jax.random.PRNGKey(0)
    k1, k2, k3, k4, k5 = jax.random.split(key, 5)
    tol = dict(atol=2e-3, rtol=2e-3)  # approx reciprocal (~2^-12 rel err)

    # 1) Canonical small shape: single ragged row tile, masked-chunk path.
    N, C, H, W = 2, 4, 16, 16
    logits = jax.random.normal(k1, (N, C, H, W), dtype=jnp.float32)
    target = jax.random.randint(k2, (N, H, W), 0, C, dtype=jnp.int32)
    out = jax.block_until_ready(iou_loss_pallas(logits, target))
    ref = _iou_loss_ref(logits, target)
    assert jnp.allclose(out, ref, **tol), (out, ref)

    # 2) Multi-tile grid: unmasked pl.loop fast path + padded ragged tail.
    N, C, H, W = 2, 4, 72, 72
    logits = jax.random.normal(k3, (N, C, H, W), dtype=jnp.float32)
    target = jax.random.randint(k4, (N, H, W), 0, C, dtype=jnp.int32)
    out = jax.block_until_ready(iou_loss_pallas(logits, target, tile_pixels=4096))
    ref = _iou_loss_ref(logits, target)
    assert jnp.allclose(out, ref, **tol), (out, ref)

    # 3) Single-channel (sigmoid) path.
    N, C, H, W = 2, 1, 16, 16
    logits = jax.random.normal(k5, (N, C, H, W), dtype=jnp.float32)
    target = jnp.zeros((N, H, W), dtype=jnp.int32)
    out = jax.block_until_ready(iou_loss_pallas(logits, target))
    ref = _iou_loss_ref(logits, target)
    assert jnp.allclose(out, ref, **tol), (out, ref)

    print("KERNEL_OK")
</pallas_src>

<mosaic_0001>
module attributes {stable_mosaic.version = 11 : i64} {
  func.func @_iou_accum_kernel(%arg0: i32, %arg1: i32, %arg2: memref<1x4x16x128xf32, #tpu.memory_space<vmem>>, %arg3: memref<1x1x16x128xi32, #tpu.memory_space<vmem>>, %arg4: memref<1x4x8x128xf32, #tpu.memory_space<vmem>>, %arg5: memref<1x4x8x128xf32, #tpu.memory_space<vmem>>) attributes {dimension_semantics = [#tpu.dimension_semantics<parallel>, #tpu.dimension_semantics<arbitrary>], iteration_bounds = array<i64: 2, 1>, scalar_prefetch = 0 : i64, scratch_operands = 0 : i64, tpu.core_type = #tpu.core_type<tc>, window_params = [{transform_indices = @transform_0, window_bounds = array<i64: 1, 4, 16, 128>}, {transform_indices = @transform_1, window_bounds = array<i64: 1, 1, 16, 128>}, {transform_indices = @transform_2, window_bounds = array<i64: 1, 4, 8, 128>}, {transform_indices = @transform_3, window_bounds = array<i64: 1, 4, 8, 128>}]} {
    %c0_i32 = arith.constant 0 : i32
    %0 = arith.cmpi eq, %arg1, %c0_i32 : i32
    %1 = arith.extui %0 : i1 to i32
    %c0_i32_0 = arith.constant 0 : i32
    %2 = arith.cmpi ne, %1, %c0_i32_0 : i32
    scf.if %2 {
      %cst_31 = arith.constant 0.000000e+00 : f32
      %61 = vector.broadcast %cst_31 : f32 to vector<4x8x128xf32>
      %c0_32 = arith.constant 0 : index
      %c0_33 = arith.constant 0 : index
      %c0_34 = arith.constant 0 : index
      %c0_35 = arith.constant 0 : index
      %62 = vector.load %arg4[%c0_32, %c0_33, %c0_34, %c0_35] : memref<1x4x8x128xf32, #tpu.memory_space<vmem>>, vector<1x4x8x128xf32>
      %63 = vector.shape_cast %62 : vector<1x4x8x128xf32> to vector<4x8x128xf32>
      %64 = vector.shape_cast %61 : vector<4x8x128xf32> to vector<1x4x8x128xf32>
      tpu.vector_store %arg4[%c0_32, %c0_33, %c0_34, %c0_35], %64 {strides = array<i32>} : memref<1x4x8x128xf32, #tpu.memory_space<vmem>>, vector<1x4x8x128xf32>,
      %cst_36 = arith.constant 0.000000e+00 : f32
      %65 = vector.broadcast %cst_36 : f32 to vector<4x8x128xf32>
      %c0_37 = arith.constant 0 : index
      %c0_38 = arith.constant 0 : index
      %c0_39 = arith.constant 0 : index
      %c0_40 = arith.constant 0 : index
      %66 = vector.load %arg5[%c0_37, %c0_38, %c0_39, %c0_40] : memref<1x4x8x128xf32, #tpu.memory_space<vmem>>, vector<1x4x8x128xf32>
      %67 = vector.shape_cast %66 : vector<1x4x8x128xf32> to vector<4x8x128xf32>
      %68 = vector.shape_cast %65 : vector<4x8x128xf32> to vector<1x4x8x128xf32>
      tpu.vector_store %arg5[%c0_37, %c0_38, %c0_39, %c0_40], %68 {strides = array<i32>} : memref<1x4x8x128xf32, #tpu.memory_space<vmem>>, vector<1x4x8x128xf32>,
    } else {
    }
    %3 = tpu.iota {dimensions = array<i32: 0>} : vector<4x16x128xi32>
    %4 = tpu.iota {dimensions = array<i32: 1>} : vector<1x16x128xi32>
    %c0_i32_1 = arith.constant 0 : i32
    %5 = vector.broadcast %c0_i32_1 : i32 to vector<1x16x128xi32>
    %6 = arith.addi %5, %4 : vector<1x16x128xi32>
    %7 = tpu.iota {dimensions = array<i32: 2>} : vector<1x16x128xi32>
    %c2_i32 = arith.constant 2 : i32
    %8 = vector.broadcast %c2_i32 : i32 to vector<1x16x128xi32>
    %9 = arith.cmpi slt, %6, %8 : vector<1x16x128xi32>
    %c2_i32_2 = arith.constant 2 : i32
    %10 = vector.broadcast %c2_i32_2 : i32 to vector<1x16x128xi32>
    %11 = arith.cmpi eq, %6, %10 : vector<1x16x128xi32>
    %c0_i32_3 = arith.constant 0 : i32
    %12 = vector.broadcast %c0_i32_3 : i32 to vector<1x16x128xi32>
    %13 = arith.cmpi slt, %7, %12 : vector<1x16x128xi32>
    %14 = arith.andi %11, %13 : vector<1x16x128xi1>
    %15 = arith.ori %9, %14 : vector<1x16x128xi1>
    %c0 = arith.constant 0 : index
    %c0_4 = arith.constant 0 : index
    %c0_5 = arith.constant 0 : index
    %c0_6 = arith.constant 0 : index
    %16 = vector.load %arg2[%c0, %c0_4, %c0_5, %c0_6] : memref<1x4x16x128xf32, #tpu.memory_space<vmem>>, vector<1x4x16x128xf32>
    %17 = vector.shape_cast %16 : vector<1x4x16x128xf32> to vector<4x16x128xf32>
    %c0_7 = arith.constant 0 : index
    %c0_8 = arith.constant 0 : index
    %c0_9 = arith.constant 0 : index
    %c0_10 = arith.constant 0 : index
    %18 = vector.load %arg3[%c0_7, %c0_8, %c0_9, %c0_10] : memref<1x1x16x128xi32, #tpu.memory_space<vmem>>, vector<1x1x16x128xi32>
    %19 = vector.shape_cast %18 : vector<1x1x16x128xi32> to vector<1x16x128xi32>
    %cst = arith.constant dense<0xFF800000> : vector<16x128xf32>
    %20 = vector.multi_reduction <maximumf>, %17, %cst [0] : vector<4x16x128xf32> to vector<16x128xf32>
    %21 = vector.shape_cast %20 : vector<16x128xf32> to vector<1x16x128xf32>
    %22 = vector.broadcast %21 : vector<1x16x128xf32> to vector<4x16x128xf32>
    %23 = arith.subf %17, %22 : vector<4x16x128xf32>
    %24 = math.exp %23 : vector<4x16x128xf32>
    %cst_11 = arith.constant dense<0.000000e+00> : vector<16x128xf32>
    %25 = vector.multi_reduction <add>, %24, %cst_11 [0] : vector<4x16x128xf32> to vector<16x128xf32>
    %26 = vector.shape_cast %25 : vector<16x128xf32> to vector<1x16x128xf32>
    %27 = tpu.reciprocal %26 {approx = true} : vector<1x16x128xf32> -> vector<1x16x128xf32>
    %28 = vector.broadcast %27 : vector<1x16x128xf32> to vector<4x16x128xf32>
    %29 = arith.mulf %24, %28 : vector<4x16x128xf32>
    %30 = vector.broadcast %19 : vector<1x16x128xi32> to vector<4x16x128xi32>
    %31 = arith.cmpi eq, %3, %30 : vector<4x16x128xi32>
    %32 = vector.broadcast %15 : vector<1x16x128xi1> to vector<4x16x128xi1>
    %33 = arith.andi %31, %32 : vector<4x16x128xi1>
    %cst_12 = arith.constant 0.000000e+00 : f32
    %34 = vector.shape_cast %15 : vector<1x16x128xi1> to vector<1x16x128xi1>
    %35 = vector.broadcast %34 : vector<1x16x128xi1> to vector<4x16x128xi1>
    %36 = vector.broadcast %cst_12 : f32 to vector<4x16x128xf32>
    %37 = arith.select %35, %29, %36 : vector<4x16x128xi1>, vector<4x16x128xf32>
    %cst_13 = arith.constant 0.000000e+00 : f32
    %38 = vector.broadcast %cst_13 : f32 to vector<4x16x128xf32>
    %39 = arith.select %33, %37, %38 : vector<4x16x128xi1>, vector<4x16x128xf32>
    %cst_14 = arith.constant 1.000000e+00 : f32
    %40 = vector.broadcast %cst_14 : f32 to vector<4x16x128xf32>
    %41 = arith.addf %37, %40 : vector<4x16x128xf32>
    %42 = arith.select %33, %41, %37 : vector<4x16x128xi1>, vector<4x16x128xf32>
    %c0_15 = arith.constant 0 : index
    %c0_16 = arith.constant 0 : index
    %c0_17 = arith.constant 0 : index
    %c0_18 = arith.constant 0 : index
    %43 = vector.load %arg4[%c0_15, %c0_16, %c0_17, %c0_18] : memref<1x4x8x128xf32, #tpu.memory_space<vmem>>, vector<1x4x8x128xf32>
    %44 = vector.shape_cast %43 : vector<1x4x8x128xf32> to vector<4x8x128xf32>
    %45 = vector.extract_strided_slice %39 {offsets = [0, 0, 0], sizes = [4, 8, 128], strides = [1, 1, 1]} : vector<4x16x128xf32> to vector<4x8x128xf32>
    %46 = vector.extract_strided_slice %39 {offsets = [0, 8, 0], sizes = [4, 8, 128], strides = [1, 1, 1]} : vector<4x16x128xf32> to vector<4x8x128xf32>
    %47 = arith.addf %45, %46 : vector<4x8x128xf32>
    %48 = arith.addf %44, %47 : vector<4x8x128xf32>
    %c0_19 = arith.constant 0 : index
    %c0_20 = arith.constant 0 : index
    %c0_21 = arith.constant 0 : index
    %c0_22 = arith.constant 0 : index
    %49 = vector.load %arg4[%c0_19, %c0_20, %c0_21, %c0_22] : memref<1x4x8x128xf32, #tpu.memory_space<vmem>>, vector<1x4x8x128xf32>
    %50 = vector.shape_cast %49 : vector<1x4x8x128xf32> to vector<4x8x128xf32>
    %51 = vector.shape_cast %48 : vector<4x8x128xf32> to vector<1x4x8x128xf32>
    tpu.vector_store %arg4[%c0_19, %c0_20, %c0_21, %c0_22], %51 {strides = array<i32>} : memref<1x4x8x128xf32, #tpu.memory_space<vmem>>, vector<1x4x8x128xf32>,
    %c0_23 = arith.constant 0 : index
    %c0_24 = arith.constant 0 : index
    %c0_25 = arith.constant 0 : index
    %c0_26 = arith.constant 0 : index
    %52 = vector.load %arg5[%c0_23, %c0_24, %c0_25, %c0_26] : memref<1x4x8x128xf32, #tpu.memory_space<vmem>>, vector<1x4x8x128xf32>
    %53 = vector.shape_cast %52 : vector<1x4x8x128xf32> to vector<4x8x128xf32>
    %54 = vector.extract_strided_slice %42 {offsets = [0, 0, 0], sizes = [4, 8, 128], strides = [1, 1, 1]} : vector<4x16x128xf32> to vector<4x8x128xf32>
    %55 = vector.extract_strided_slice %42 {offsets = [0, 8, 0], sizes = [4, 8, 128], strides = [1, 1, 1]} : vector<4x16x128xf32> to vector<4x8x128xf32>
    %56 = arith.addf %54, %55 : vector<4x8x128xf32>
    %57 = arith.addf %53, %56 : vector<4x8x128xf32>
    %c0_27 = arith.constant 0 : index
    %c0_28 = arith.constant 0 : index
    %c0_29 = arith.constant 0 : index
    %c0_30 = arith.constant 0 : index
    %58 = vector.load %arg5[%c0_27, %c0_28, %c0_29, %c0_30] : memref<1x4x8x128xf32, #tpu.memory_space<vmem>>, vector<1x4x8x128xf32>
    %59 = vector.shape_cast %58 : vector<1x4x8x128xf32> to vector<4x8x128xf32>
    %60 = vector.shape_cast %57 : vector<4x8x128xf32> to vector<1x4x8x128xf32>
    tpu.vector_store %arg5[%c0_27, %c0_28, %c0_29, %c0_30], %60 {strides = array<i32>} : memref<1x4x8x128xf32, #tpu.memory_space<vmem>>, vector<1x4x8x128xf32>,
    return
  }
  func.func @transform_0(%arg0: i32, %arg1: i32) -> (i32, i32, i32, i32) {
    %c0_i32 = arith.constant 0 : i32
    %c0_i32_0 = arith.constant 0 : i32
    %c0_i32_1 = arith.constant 0 : i32
    return %arg0, %c0_i32, %arg1, %c0_i32_0 : i32, i32, i32, i32
  }
  func.func @transform_1(%arg0: i32, %arg1: i32) -> (i32, i32, i32, i32) {
    %c0_i32 = arith.constant 0 : i32
    %c0_i32_0 = arith.constant 0 : i32
    %c0_i32_1 = arith.constant 0 : i32
    return %arg0, %c0_i32, %arg1, %c0_i32_0 : i32, i32, i32, i32
  }
  func.func @transform_2(%arg0: i32, %arg1: i32) -> (i32, i32, i32, i32) {
    %c0_i32 = arith.constant 0 : i32
    %c0_i32_0 = arith.constant 0 : i32
    %c0_i32_1 = arith.constant 0 : i32
    %c0_i32_2 = arith.constant 0 : i32
    return %arg0, %c0_i32, %c0_i32_0, %c0_i32_1 : i32, i32, i32, i32
  }
  func.func @transform_3(%arg0: i32, %arg1: i32) -> (i32, i32, i32, i32) {
    %c0_i32 = arith.constant 0 : i32
    %c0_i32_0 = arith.constant 0 : i32
    %c0_i32_1 = arith.constant 0 : i32
    %c0_i32_2 = arith.constant 0 : i32
    return %arg0, %c0_i32, %c0_i32_0, %c0_i32_1 : i32, i32, i32, i32
  }
}

</mosaic_0001>

<bundles_post_ra>
// kernel: tpu_custom_call.1
= control target key start
LH: loop header
LB: loop body
LE: loop exit
PB: predicated region body
PF: predicated region fallthrough
CT: control target
= control target key end

     0   :  { %9 = vsyncpa [#allocation3], 0  ;;  %s1192_s0 = inlined_call_operand.hbm [shape: f32[2,4,2,128], index: 0, kind: input, shape index: {}]   ;;  %s1193_s1 = inlined_call_operand.hbm [shape: s32[2,1,2,128], index: 1, kind: input, shape index: {}]   ;;  %s1194_s2 = inlined_call_operand.hbm [shape: f32[2,4,8,128], index: 2, kind: output, shape index: {0}]   ;;  %s1195_s3 = inlined_call_operand.hbm [shape: f32[2,4,8,128], index: 3, kind: output, shape index: {1}]  }
   0x1   :  { %11 = vsyncpa [#allocation3 + $0x1], 0 }
   0x2   :  { %12 = vsyncpa [#allocation6], 0 }
   0x3   :  { %14 = vsyncpa [#allocation6 + $0x1], 0 }
   0x4   :  { %15 = vsyncpa [#allocation4], 0 }
   0x5   :  { %17 = vsyncpa [#allocation4 + $0x1], 0 }
   0x6   :  { %18 = vsyncpa [#allocation9], 0 }
   0x7   :  { %20 = vsyncpa [#allocation9 + $0x1], 0  ;;  %s926_s12 = smov 0   ;;  %s928_s13 = smov 0  }
   0x8   :  { %s930_s14 = smov 0   ;;  %s932_s15 = smov 0  }
   0x9   :  { %s934_s16 = smov 0   ;;  %s936_s17 = smov 0  }
   0xa LB: > { %s641_s18 = sadd.s32 4294967295, %s892_s17   ;;  %s642_s19 = sadd.s32 4294967294, %s892_s17   ;;  %s892_s17 = sphi %s936_s17, %s26_s17   ;;  %s888_s16 = sphi %s934_s16, %s1215_s16   ;;  %s884_s15 = sphi %s932_s15, %s1214_s15   ;;  %s880_s14 = sphi %s930_s14, %s1213_s14   ;;  %s876_s13 = sphi %s928_s13, %s1212_s13   ;;  %s872_s12 = sphi %s926_s12, %s1211_s12  }
   0xb   : > { %s38_s20 = sadd.s32 1, %s888_s16  ;;  %s47_s21 = sadd.s32 1, %s880_s14 }
   0xc   : > { %p40_p0 = scmp.ge.s32.totalorder %s38_s20, 2  ;;  %p54_p1 = scmp.ne.s32.totalorder %s880_s14, %s876_s13 }
   0xd   : > { %p55_p2 = scmp.eq.s32.totalorder %s892_s17, 0  ;;  %p60_p3 = scmp.ne.s32.totalorder %s876_s13, %s872_s12 }
   0xe   : > { %s1217_s20 = smov (%p40_p0, %s38_s20), 0  ;;  %p61_p5 = scmp.eq.s32.totalorder %s641_s18, 0 }
   0xf   : > { %p967_p4 = por %p55_p2, %p54_p1  ;;  %s42_s23 = ssub.s32 %s888_s16, %s1217_s20 }
  0x10   : > { %p112_p6 = scmp.eq.s32.totalorder %s641_s18, 1  ;;  %p45_p7 = scmp.eq.s32.totalorder %s42_s23, 0 }
  0x11   : > { %p973_p8 = por %p61_p5, %p60_p3  ;;  %p118_p10 = scmp.eq.s32.totalorder %s642_s19, 1 }
  0x12   : > { %p977_p9 = por %p112_p6, %p54_p1  ;;  %p1196_p12 = scmp.ge.s32.totalorder %s892_s17, 2 }
  0x13   : > { %s982_s26 = scalar_select %p45_p7, %s880_s14, %s47_s21  }
  0x14   : > { %p984_p11 = por %p118_p10, %p60_p3  ;;  %160 = sbr.rel (%p1196_p12) target bundleno = 78 (0x4e), region = 16 }
  0x16   : > { %s1200_s27 = scalar_select %p984_p11, 1, 0 }
  0x1b   : > { %163 = sbr.rel (!%p967_p4) target bundleno = 47 (0x2f), region = 20 }
  0x22   : > { %s164_s28 = sand.u32 1, %s880_s14  }
  0x23   : > { %s645_s29 = sshll.u32 %s164_s28, 6  ;;  %s165_s30 = scalar_lea.sflag [#allocation3], %s164_s28 }
  0x24   : > { %s168_s4 = scalar_lea.vmem [#allocation2], %s645_s29 }
  0x25   : > { %174 = vsyncadd %s165_s30, 896  ;;  %s665_s5 = sshll.u32 %s888_s16, 7  ;;  %s186_s6 = sld [smem:[#allocation0]]  }
  0x26   : > { %s179_s9 = scalar_lea.hbm %s1192_s0, %s665_s5  ;;  %s194_s10 = sshll.u32 %s168_s4, 4  ;;  %s195_s10 = int_to_ptr.vmem [resolvable:$true] %s194_s10 }
  0x27   : > { %s894_s11 = smov 32   ;;  %s895_s18 = smov 256  }
  0x28   : > { %201 = sst [smem:[#allocation11]] %s894_s11  ;;  %s896_s19 = smov 1  }
  0x29   : > { %203 = sst [smem:[#allocation11 + $0x1]] %s895_s18  ;;  %s897_s28 = smov 2  }
  0x2a   : > { %205 = sst [smem:[#allocation11 + $0x2]] %s896_s19  ;;  %s898_s29 = smov [#allocation10]  }
  0x2b   : > { %s648_s21 = sshll.u32 %s186_s6, 26  ;;  %207 = sst [smem:[#allocation11 + $0x3]] %s894_s11 }
  0x2c   : > { %s649_s23 = sadd.s32 134217728, %s648_s21  ;;  %209 = sst [smem:[#allocation11 + $0x4]] %s894_s11 }
  0x2d   : > { %211 = sst [smem:[#allocation11 + $0x5]] %s897_s28 }
  0x2e   : > { %213 = dma.general %s179_s9, 128, %s195_s10, %s165_s30, %s898_s29, [#allocation11], %s649_s23, 0  }
  0x2f PF: > { %216 = sbr.rel (!%p967_p4) target bundleno = 78 (0x4e), region = 24  ;;  %s217_s4 = sand.u32 (%p967_p4), 1, %s880_s14  }
  0x30   : > { %s650_s5 = sshll.u32 (%p967_p4), %s217_s4, 4  ;;  %s1001_s7 = scalar_lea.sflag (%p967_p4), [#allocation6], %s217_s4 }
  0x31   : > { %s221_s8 = scalar_lea.vmem (%p967_p4), [#allocation5], %s650_s5 }
  0x36   : > { %227 = vsyncadd %s1001_s7, 224  ;;  %s651_s6 = sshll.u32 %s888_s16, 5  ;;  %s233_s18 = sshll.u32 %s221_s8, 4  ;;  %s234_s18 = int_to_ptr.vmem [resolvable:$true] %s233_s18 }
  0x37   : > { %s1008_s21 = scalar_lea.hbm %s1193_s1, %s651_s6  ;;  %s752_s10 = scalar_lea.hbm %s1193_s1, 64 }
  0x38   : > { %s750_s22 = scalar_lea.hbm %s1008_s21, 32  ;;  %p753_p0 = scmp.lt.u32.totalorder %s1008_s21, %s1193_s1 }
  0x39   : > { %p751_p13 = scmp.ne.s32.totalorder %s1008_s21, %s750_s22  ;;  %p754_p1 = scmp.lt.u32.totalorder %s752_s10, %s750_s22 }
  0x3a   : > { %p756_p3 = scmp.lt.u32.totalorder %s750_s22, %s1008_s21 }
  0x3b   : > { %p755_p2 = por %p754_p1, %p753_p0 }
  0x3d   : > { %p757_p4 = por %p756_p3, %p755_p2 }
  0x3f   : > { %p758_p5 = pnand %p757_p4, %p751_p13 }
  0x41   : > { %761 = shalt.err (!%p758_p5)
}
  0x42   : > { %s762_s29 = scalar_lea.vmem %s234_s18, 32  ;;  %s899_s4 = smov [#allocation5]  }
  0x43   : > { %p763_p6 = scmp.ne.s32.totalorder %s234_s18, %s762_s29  ;;  %s764_s5 = sshll.u32 %s899_s4, 4  ;;  %s765_s5 = int_to_ptr.vmem [resolvable:$false] %s764_s5 }
  0x44   : > { %s766_s8 = scalar_lea.vmem %s765_s5, 512  ;;  %p767_p7 = scmp.lt.s32.totalorder %s234_s18, %s765_s5 }
  0x45   : > { %p768_p10 = scmp.lt.s32.totalorder %s766_s8, %s762_s29 }
  0x47   : > { %p769_p12 = por %p768_p10, %p767_p7 }
  0x49   : > { %p770_p11 = pnand %p769_p12, %p763_p6 }
  0x4b   : > { %773 = shalt.err (!%p770_p11)
}
  0x4c   : > { %s900_s6 = smov 32   ;;  %s901_s11 = smov 2  }
  0x4d   : > { %239 = dma.hbm_to_vmem [thread:$0]  %s1008_s21, 32, %s234_s18, %s1001_s7, %s900_s6, %s900_s6, %s901_s11  }
  0x4e PF: > { %p652_p13 = scmp.ge.s32.totalorder %s892_s17, 1  ;;  %p241_p0 = scmp.lt.s32.totalorder %s892_s17, 3 }
  0x50   : > { %p242_p1 = pnand %p652_p13, %p241_p0 }
  0x51   : > { %s1025_s19 = sand.u32 (!%p242_p1), 1, %s876_s13  }
  0x52   : > { %245 = sbr.rel (%p242_p1) target bundleno = 176 (0xb0), region = 28  ;;  %s653_s22 = sshll.u32 (!%p242_p1), %s1025_s19, 6 }
  0x53   : > { %s248_s30 = scalar_lea.sflag (!%p242_p1), [#allocation3], %s1025_s19  ;;  %s251_s9 = scalar_lea.vmem (!%p242_p1), [#allocation2], %s653_s22 }
  0x59   : > { %855 = dma.done.wait (%p973_p8), %s248_s30, 1024  }
  0x5a   : > { %857 = vsyncadd (%p973_p8), %s248_s30, 4294966272  ;;  %s654_s7 = sshll.u32 %s1025_s19, 4  ;;  %s257_s18 = scalar_lea.sflag [#allocation6], %s1025_s19 }
  0x5b   : > { %s1035_s21 = scalar_lea.vmem [#allocation5], %s654_s7 }
  0x5c   : > { %859 = dma.done.wait (%p973_p8), %s257_s18, 256  }
  0x5d   : > { %861 = vsyncadd (%p973_p8), %s257_s18, 4294967040  ;;  %v325_v0 = vld [vmem:[%s251_s9] sm:$0xff]  ;;  %v327_v1 = vld [vmem:[%s251_s9 + $0x10] sm:$0xff]  ;;  %v311_v22 = vlaneseq  ;;  %s655_s24 = sshll.u32 %s1025_s19, 5  ;;  %s666_s10 = sshll.u32 %s884_s15, 9 }
  0x5e   : > { %v329_v2 = vld [vmem:[%s251_s9 + $0x20] sm:$0xff]  ;;  %v331_v3 = vld [vmem:[%s251_s9 + $0x30] sm:$0xff]  ;;  %s285_s23 = scalar_lea.vmem [#allocation7], %s655_s24  ;;  %s1083_s5 = scalar_lea.hbm %s1194_s2, %s666_s10 }
  0x5f   : > { %v335_v4 = vmax.f32 %v325_v0, %v329_v2  ;;  %v336_v5 = vmax.f32 %v327_v1, %v331_v3  ;;  %v333_v23 = vld [vmem:[%s1035_s21] sm:$0xff]  ;;  %v312_v24 = vshrl.u32 %v311_v22, 7  ;;  %s484_s28 = sshll.u32 %s285_s23, 4  ;;  %s1089_s8 = scalar_lea.vmem [#allocation8], %s655_s24  ;;  %s1085_s28 = int_to_ptr.vmem [resolvable:$true] %s484_s28 }
  0x60   : > { %vm381_vm0 = vcmp.eq.s32.totalorder %v333_v23, 0  ;;  %vm383_vm1 = vcmp.eq.s32.totalorder %v333_v23, 1  ;;  %vm385_vm3 = vcmp.eq.s32.totalorder %v333_v23, 2  ;;  %vm387_vm5 = vcmp.eq.s32.totalorder %v333_v23, 3  ;;  %s500_s6 = sshll.u32 %s1089_s8, 4  ;;  %s466_s11 = scalar_lea.sflag [#allocation4], %s1025_s19  ;;  %s1136_s6 = int_to_ptr.vmem [resolvable:$true] %s500_s6 }
  0x61   : > { %v337_v6 = vmax.f32 %v335_v4, %v336_v5  ;;  %vm316_vm2 = vcmp.lt.s32.totalorder %v312_v24, 2  ;;  %s774_s22 = scalar_lea.vmem %s1085_s28, 512  ;;  %s902_s30 = smov [#allocation7]  }
  0x62   : > { %vm1044_vm4 = vmand %vm381_vm0, %vm316_vm2  ;;  %p775_p8 = scmp.ne.s32.totalorder %s1085_s28, %s774_s22  ;;  %s778_s9 = sshll.u32 %s902_s30, 4  ;;  %s779_s9 = int_to_ptr.vmem [resolvable:$false] %s778_s9 }
  0x63   : > { %v341_v7 = vsub.f32 %v325_v0, %v337_v6  ;;  %v343_v8 = vsub.f32 %v327_v1, %v337_v6  ;;  %v345_v9 = vsub.f32 %v329_v2, %v337_v6  ;;  %v347_v10 = vsub.f32 %v331_v3, %v337_v6  ;;  %vm1049_vm6 = vmand %vm383_vm1, %vm316_vm2  ;;  %s780_s7 = scalar_lea.vmem %s779_s9, 1024  ;;  %p781_p2 = scmp.lt.s32.totalorder %s1085_s28, %s779_s9 }
  0x64   : > { %vm1054_vm7 = vmand %vm385_vm3, %vm316_vm2  ;;  %p776_p11 = pnand %p775_p8, %p977_p9  ;;  %p782_p3 = scmp.lt.s32.totalorder %s780_s7, %s774_s22 }
  0x65   : > { %v349_v11 = vmul.f32 1.442695, %v341_v7  ;;  %v353_v12 = vmul.f32 1.442695, %v343_v8  ;;  %v357_v13 = vmul.f32 1.442695, %v345_v9  ;;  %vm1059_vm8 = vmand %vm387_vm5, %vm316_vm2 }
  0x66   : > { %v361_v14 = vmul.f32 1.442695, %v347_v10  ;;  %p777_p12 = pneg %p776_p11  ;;  %p783_p4 = por %p782_p3, %p781_p2 }
  0x67   : > { %740 = vpow2.f32 %v349_v11 }
  0x68   : > { %742 = vpow2.f32 %v353_v12  ;;  %p784_p5 = pnand %p783_p4, %p777_p12 }
  0x69   : > { %744 = vpow2.f32 %v357_v13 }
  0x6a   : > { %746 = vpow2.f32 %v361_v14 }
  0x71   : > { %v741_v15 = vpop.eup %740 }
  0x72   : > { %v743_v16 = vpop.eup %742 }
  0x73   : > { %v745_v17 = vpop.eup %744  ;;  %v365_v18 = vadd.f32 %v743_v16, %v741_v15 }
  0x74   : > { %v747_v19 = vpop.eup %746 }
  0x75   : > { %v366_v20 = vadd.f32 %v745_v17, %v365_v18 }
  0x77   : > { %v367_v21 = vadd.f32 %v747_v19, %v366_v20 }
  0x79   : > { %748 = vrcp.f32 %v367_v21 }
  0x83   : > { %v749_v27 = vpop.eup %748 }
  0x84   : > { %v373_v29 = vmul.f32 %v749_v27, %v741_v15  ;;  %v375_v30 = vmul.f32 %v749_v27, %v743_v16  ;;  %v377_v31 = vmul.f32 %v749_v27, %v745_v17  ;;  %v379_v32 = vmul.f32 %v749_v27, %v747_v19 }
  0x86   : > { %v401_v34 = vsel %vm316_vm2, %v373_v29, 0.0  ;;  %v403_v35 = vsel %vm316_vm2, %v375_v30, 0.0  ;;  %v405_v36 = vsel %vm316_vm2, %v377_v31, 0.0  ;;  %v407_v37 = vsel %vm316_vm2, %v379_v32, 0.0 }
  0x87   : > { %v409_v38 = vsel %vm1044_vm4, %v401_v34, 0.0  ;;  %v411_v39 = vsel %vm1049_vm6, %v403_v35, 0.0  ;;  %v413_v40 = vsel %vm1054_vm7, %v405_v36, 0.0  ;;  %v415_v41 = vsel %vm1059_vm8, %v407_v37, 0.0 }
  0x88   : > { %v417_v42 = vadd.f32 1.0, %v401_v34  ;;  %v419_v43 = vadd.f32 1.0, %v403_v35  ;;  %v421_v44 = vadd.f32 1.0, %v405_v36  ;;  %v423_v45 = vadd.f32 1.0, %v407_v37  ;;  %445 = vst [vmem:[%s285_s23] sm:$0xff] %v409_v38  ;;  %446 = vst [vmem:[%s285_s23 + $0x8] sm:$0xff] %v411_v39 }
  0x89   : > { %447 = vst [vmem:[%s285_s23 + $0x10] sm:$0xff] %v413_v40  ;;  %448 = vst [vmem:[%s285_s23 + $0x18] sm:$0xff] %v415_v41 }
  0x8a   : > { %v425_v46 = vsel %vm1044_vm4, %v417_v42, %v401_v34  ;;  %v427_v47 = vsel %vm1049_vm6, %v419_v43, %v403_v35  ;;  %v429_v48 = vsel %vm1054_vm7, %v421_v44, %v405_v36  ;;  %v431_v49 = vsel %vm1059_vm8, %v423_v45, %v407_v37 }
  0x8b   : > { %787 = shalt.err (!%p784_p5)
}
  0x8c   : > { %s788_s18 = scalar_lea.hbm %s1083_s5, 512  ;;  %s792_s23 = scalar_lea.hbm %s1194_s2, 1024 }
  0x8d   : > { %p789_p6 = scmp.ne.s32.totalorder %s1083_s5, %s788_s18  ;;  %p793_p13 = scmp.lt.u32.totalorder %s1083_s5, %s1194_s2 }
  0x8e   : > { %p794_p0 = scmp.lt.u32.totalorder %s792_s23, %s788_s18  ;;  %p796_p8 = scmp.lt.u32.totalorder %s788_s18, %s1083_s5 }
  0x8f   : > { %p790_p7 = pnand %p789_p6, %p977_p9 }
  0x90   : > { %p795_p1 = por %p794_p0, %p793_p13 }
  0x91   : > { %p791_p10 = pneg %p790_p7 }
  0x92   : > { %p797_p11 = por %p796_p8, %p795_p1 }
  0x94   : > { %p798_p12 = pnand %p797_p11, %p791_p10 }
  0x96   : > { %801 = shalt.err (!%p798_p12)
}
  0x97   : > { %s903_s22 = smov 128   ;;  %s904_s30 = smov 8   ;;  %461 = vst [vmem:[%s1089_s8] sm:$0xff] %v425_v46  ;;  %462 = vst [vmem:[%s1089_s8 + $0x8] sm:$0xff] %v427_v47 }
  0x98   : > { %670 = dma.vmem_to_hbm [thread:$0]  (%p977_p9), %s1085_s28, 512, %s1083_s5, %s466_s11, %s903_s22, %s903_s22, %s904_s30  }
  0x99   : > { %s1132_s18 = scalar_lea.hbm %s1195_s3, %s666_s10  ;;  %463 = vst [vmem:[%s1089_s8 + $0x10] sm:$0xff] %v429_v48  ;;  %464 = vst [vmem:[%s1089_s8 + $0x18] sm:$0xff] %v431_v49  ;;  %s471_s21 = scalar_lea.sflag [#allocation9], %s1025_s19 }
  0x9a   : > { %s802_s24 = scalar_lea.vmem %s1136_s6, 512  ;;  %s905_s15 = smov [#allocation8]  }
  0x9b   : > { %p803_p2 = scmp.ne.s32.totalorder %s1136_s6, %s802_s24  ;;  %s806_s28 = sshll.u32 %s905_s15, 4  ;;  %s807_s28 = int_to_ptr.vmem [resolvable:$false] %s806_s28 }
  0x9c   : > { %s808_s10 = scalar_lea.vmem %s807_s28, 1024  ;;  %p809_p5 = scmp.lt.s32.totalorder %s1136_s6, %s807_s28 }
  0x9d   : > { %p804_p3 = pnand %p803_p2, %p977_p9  ;;  %p810_p6 = scmp.lt.s32.totalorder %s808_s10, %s802_s24 }
  0x9f   : > { %p805_p4 = pneg %p804_p3  ;;  %p811_p7 = por %p810_p6, %p809_p5 }
  0xa1   : > { %p812_p10 = pnand %p811_p7, %p805_p4 }
  0xa3   : > { %815 = shalt.err (!%p812_p10)
}
  0xa4   : > { %s816_s5 = scalar_lea.hbm %s1132_s18, 512  ;;  %s820_s23 = scalar_lea.hbm %s1195_s3, 1024 }
  0xa5   : > { %p817_p13 = scmp.ne.s32.totalorder %s1132_s18, %s816_s5  ;;  %p821_p8 = scmp.lt.u32.totalorder %s1132_s18, %s1195_s3 }
  0xa6   : > { %p822_p11 = scmp.lt.u32.totalorder %s820_s23, %s816_s5  ;;  %p824_p2 = scmp.lt.u32.totalorder %s816_s5, %s1132_s18 }
  0xa7   : > { %p818_p0 = pnand %p817_p13, %p977_p9 }
  0xa8   : > { %p823_p12 = por %p822_p11, %p821_p8 }
  0xa9   : > { %p819_p1 = pneg %p818_p0 }
  0xaa   : > { %p825_p3 = por %p824_p2, %p823_p12 }
  0xac   : > { %p826_p4 = pnand %p825_p3, %p819_p1 }
  0xae   : > { %829 = shalt.err (!%p826_p4)
}
  0xaf   : > { %671 = dma.vmem_to_hbm [thread:$0]  (%p977_p9), %s1136_s6, 512, %s1132_s18, %s471_s21, %s903_s22, %s903_s22, %s904_s30  }
  0xb0 PF: > { %s515_s9 = sand.u32 1, %s872_s12   ;;  %p1209_p5 = scmp.ne.s32.totalorder %s1200_s27, 0 }
  0xb1   : > { %p1210_p6 = scmp.ge.s32.totalorder %s892_s17, 2  ;;  %s516_s7 = scalar_lea.sflag [#allocation4], %s515_s9 }
  0xb3   : > { %p675_p7 = pnand %p1210_p6, %p1209_p5 }
  0xb5   : > { %863 = dma.done.wait (!%p675_p7), %s516_s7, 512  }
  0xb6   : > { %865 = vsyncadd (!%p675_p7), %s516_s7, 4294966784  ;;  %s525_s25 = scalar_lea.sflag [#allocation9], %s515_s9 }
  0xb7   : > { %867 = dma.done.wait (!%p675_p7), %s525_s25, 512  }
  0xb8   : > { %869 = vsyncadd (!%p675_p7), %s525_s25, 4294966784  ;;  %s26_s17 = sadd.s32 1, %s892_s17   ;;  %s1211_s12 = smov %s876_s13 }
  0xb9   : > { %p23_p10 = scmp.ge.s32.totalorder %s26_s17, 4   ;;  %s1212_s13 = smov %s880_s14 }
  0xba   : > { %s1213_s14 = smov %s982_s26  ;;  %s1214_s15 = smov %s888_s16 }
  0xbb   : > { %s1215_s16 = smov %s1217_s20  ;;  %25 = sbr.rel (!%p23_p10) target bundleno = 10 (0xa), region = 112 }
  0xc2   :  { %530 = vsyncpa [#allocation3], 1 }
  0xc3   :  { %532 = vsyncpa [#allocation3 + $0x1], 1 }
  0xc4   :  { %533 = vsyncpa [#allocation6], 1 }
  0xc5   :  { %535 = vsyncpa [#allocation6 + $0x1], 1 }
  0xc6   :  { %536 = vsyncpa [#allocation4], 1 }
  0xc7   :  { %538 = vsyncpa [#allocation4 + $0x1], 1 }
  0xc8   :  { %539 = vsyncpa [#allocation9], 1 }
  0xc9   :  { %541 = vsyncpa [#allocation9 + $0x1], 1 }

</bundles_post_ra>
